<compile_context>
chip_gen: v6e
topology: v6e:2x2x1
jax: 0.10.0
libtpu: 0.0.40
codegen_flags: <defaults>
</compile_context>

<pallas_src>
import jax
import jax.numpy as jnp
from jax.experimental import pallas as pl
from jax.experimental.pallas import tpu as pltpu


# ----------------------------------------------------------------------------
# Kernel
# ----------------------------------------------------------------------------
def _gcn_kernel(x_ref, adj_ref, rs_ref, w1_ref, b1_ref, w2_ref, b2_ref, o_ref):
    # x_ref  : (N, B*F)     batch packed into lanes (batch-major columns)
    # adj_ref: (N, N)
    # rs_ref : (N, 1)       rowsum(adj) for the reassociated layer-1 bias
    # w1_ref : (B*F, B*H)   block-diagonal replication of W1 (in, out)
    # b1_ref : (1, B*H)
    # w2_ref : (B*H, B*F)   block-diagonal replication of W2 (in, out)
    # b2_ref : (1, B*F)
    # o_ref  : (N, B*F)
    x = x_ref[...]
    adj = adj_ref[...]

    # Layer 1 (reassociated, exact for any adj):
    #   adj @ (x @ W1 + b1) == (adj @ x) @ W1 + rowsum(adj)[:,None] * b1
    z = jnp.dot(adj, x, preferred_element_type=jnp.float32)            # (N, B*F)
    h = jnp.dot(z, w1_ref[...], preferred_element_type=jnp.float32)    # (N, B*H)
    h = jnp.maximum(h + rs_ref[...] * b1_ref[...], 0.0)

    # Layer 2 (adj matmul already at the narrow B*F lane width):
    t = jnp.dot(h, w2_ref[...], preferred_element_type=jnp.float32) + b2_ref[...]
    y = jnp.maximum(jnp.dot(adj, t, preferred_element_type=jnp.float32), 0.0)

    o_ref[...] = y.astype(o_ref.dtype)


# ----------------------------------------------------------------------------
# One-time parameter preparation (hoisted out of the per-call path)
# ----------------------------------------------------------------------------
def prepare_gcn_params(adj, w1, b1, w2, b2, batch):
    """Build the arrays the kernel consumes, ONCE per (graph, weights, batch).

    adj: (N, N) normalized adjacency (D^-1 (A + I)).
    w1: (6, hid), b1: (1, hid), w2: (hid, 6), b2: (1, 6)   (weights stored as
    (in, out) = W^T of the PyTorch layout).
    """
    eye_b = jnp.eye(batch, dtype=w1.dtype)
    return {
        "adj": adj,
        "adj_rowsum": jnp.sum(adj, axis=1, keepdims=True),     # (N, 1)
        "w1_blk": jnp.kron(eye_b, w1),                         # (B*6,  B*hid)
        "b1_blk": jnp.tile(b1, (1, batch)),                    # (1, B*hid)
        "w2_blk": jnp.kron(eye_b, w2),                         # (B*hid, B*6)
        "b2_blk": jnp.tile(b2, (1, batch)),                    # (1, B*6)
    }


# ----------------------------------------------------------------------------
# Forward passes
# ----------------------------------------------------------------------------
def gcn_forward_packed(x_packed, params):
    """Primary entry point: activations stay in the (N, B*F) packed layout,
    so stacked / repeated calls avoid per-call repacking."""
    N, BF = x_packed.shape
    BH = params["w1_blk"].shape[1]

    flops = 4 * N * N * BF + 4 * N * BF * BH
    bytes_accessed = 4 * (
        x_packed.size + params["adj"].size + params["adj_rowsum"].size
        + params["w1_blk"].size + params["b1_blk"].size
        + params["w2_blk"].size + params["b2_blk"].size + N * BF
    )

    vmem = pl.BlockSpec(memory_space=pltpu.MemorySpace.VMEM)
    return pl.pallas_call(
        _gcn_kernel,
        out_shape=jax.ShapeDtypeStruct((N, BF), jnp.float32),
        in_specs=[vmem] * 7,
        out_specs=vmem,
        cost_estimate=pl.CostEstimate(
            flops=flops, transcendentals=0, bytes_accessed=bytes_accessed),
    )(
        x_packed,
        params["adj"], params["adj_rowsum"],
        params["w1_blk"], params["b1_blk"],
        params["w2_blk"], params["b2_blk"],
    )


def gcn_test_forward(x, params):
    """PyTorch-shape-compatible wrapper: x (B, N, ...) -> (B, N, 1, 6).
    Only use this when the caller needs the original layout; otherwise stay
    in the packed layout via gcn_forward_packed."""
    B, N = x.shape[0], x.shape[1]
    flow_x = x.reshape(B, N, -1)                     # == x.view(B, N, -1)
    f_in = flow_x.shape[-1]                          # 6

    # (B, N, F) -> (N, B, F) -> (N, B*F): batch folded into the lane axis.
    x_packed = jnp.transpose(flow_x, (1, 0, 2)).reshape(N, B * f_in)
    out_packed = gcn_forward_packed(x_packed, params)

    # (N, B*F) -> (B, N, F) -> unsqueeze(2) -> (B, N, 1, F).
    out = jnp.transpose(out_packed.reshape(N, B, f_in), (1, 0, 2))
    return out[:, :, None, :]


# ----------------------------------------------------------------------------
# Deterministic test data helpers
# ----------------------------------------------------------------------------
def _torch_linear_init(key, fan_in, fan_out):
    """nn.Linear-style init: U(-1/sqrt(fan_in), 1/sqrt(fan_in))."""
    kw, kb = jax.random.split(key)
    bound = 1.0 / jnp.sqrt(jnp.float32(fan_in))
    w = jax.random.uniform(kw, (fan_in, fan_out), jnp.float32, -bound, bound)
    b = jax.random.uniform(kb, (1, fan_out), jnp.float32, -bound, bound)
    return w, b


def _process_graph(graph_data):
    """Replicates GCN_test.process_graph: D^-1 (A + I)."""
    N = graph_data.shape[0]
    g = graph_data + jnp.eye(N, dtype=jnp.float32)
    deg = jnp.sum(g, axis=1)
    inv_deg = jnp.where(deg > 0, 1.0 / deg, 0.0)
    return inv_deg[:, None] * g


if __name__ == "__main__":
    key = jax.random.PRNGKey(0)
    k_x, k_adj, k_l1, k_l2 = jax.random.split(key, 4)

    # B=4 so B*hid = 128 lanes (full v5e MXU pass, good fill on v6e/v7x)
    # while keeping the problem small.
    B, N, hid_c = 4, 16, 32
    in_feat = 6   # linear_1 input dim fixed at 6 by the module

    # Input: (B, N, 1, 6) — view(B, N, -1) flattens to (B, N, 6).
    x = jax.random.normal(k_x, (B, N, 1, in_feat), dtype=jnp.float32)

    # Deterministic adjacency, normalized like process_graph.
    raw_adj = (jax.random.uniform(k_adj, (N, N)) > 0.6).astype(jnp.float32)
    raw_adj = jnp.maximum(raw_adj, raw_adj.T)        # symmetric 0/1 graph
    adj = _process_graph(raw_adj)

    # Parameters (stored as (in, out) = W^T of the PyTorch layout).
    w1, b1 = _torch_linear_init(k_l1, in_feat, hid_c)   # linear_1: 6 -> hid
    w2, b2 = _torch_linear_init(k_l2, hid_c, in_feat)   # linear_2: hid -> 6

    # One-time prep (kron/tile/rowsum) — NOT on the per-call path.
    params = prepare_gcn_params(adj, w1, b1, w2, b2, B)
    params = jax.tree_util.tree_map(jax.block_until_ready, params)

    forward = jax.jit(gcn_test_forward)
    out = forward(x, params)
    out = jax.block_until_ready(out)

    # Pure-JAX reference check (shared weights applied per batch).
    flow = x.reshape(B, N, -1)
    h_ref = jnp.maximum(jnp.einsum("nm,bmf->bnf", adj, flow @ w1 + b1), 0.0)
    y_ref = jnp.maximum(jnp.einsum("nm,bmf->bnf", adj, h_ref @ w2 + b2), 0.0)
    y_ref = y_ref[:, :, None, :]
    assert out.shape == (B, N, 1, in_feat)
    assert jnp.allclose(out, y_ref, atol=1e-4, rtol=1e-4)

    print("KERNEL_OK")
</pallas_src>

<mosaic_0001>
module attributes {stable_mosaic.version = 11 : i64} {
  func.func @_gcn_kernel(%arg0: memref<16x24xf32, #tpu.memory_space<vmem>>, %arg1: memref<16x16xf32, #tpu.memory_space<vmem>>, %arg2: memref<16x1xf32, #tpu.memory_space<vmem>>, %arg3: memref<24x128xf32, #tpu.memory_space<vmem>>, %arg4: memref<1x128xf32, #tpu.memory_space<vmem>>, %arg5: memref<128x24xf32, #tpu.memory_space<vmem>>, %arg6: memref<1x24xf32, #tpu.memory_space<vmem>>, %arg7: memref<16x24xf32, #tpu.memory_space<vmem>>) attributes {dimension_semantics = [], scalar_prefetch = 0 : i64, scratch_operands = 0 : i64, tpu.core_type = #tpu.core_type<tc>} {
    %c0 = arith.constant 0 : index
    %c0_0 = arith.constant 0 : index
    %0 = vector.load %arg0[%c0, %c0_0] : memref<16x24xf32, #tpu.memory_space<vmem>>, vector<16x24xf32>
    %c0_1 = arith.constant 0 : index
    %c0_2 = arith.constant 0 : index
    %1 = vector.load %arg1[%c0_1, %c0_2] : memref<16x16xf32, #tpu.memory_space<vmem>>, vector<16x16xf32>
    %cst = arith.constant dense<0.000000e+00> : vector<16x24xf32>
    %2 = tpu.matmul %1, %0, %cst {dimension_numbers = #tpu.dot_dimension_numbers<[1], [0], [0], [1], [0, 0, 1, 1], [], []>} : vector<16x16xf32>, vector<16x24xf32>, vector<16x24xf32> -> vector<16x24xf32>
    %c0_3 = arith.constant 0 : index
    %c0_4 = arith.constant 0 : index
    %3 = vector.load %arg3[%c0_3, %c0_4] : memref<24x128xf32, #tpu.memory_space<vmem>>, vector<24x128xf32>
    %cst_5 = arith.constant dense<0.000000e+00> : vector<16x128xf32>
    %4 = tpu.matmul %2, %3, %cst_5 {dimension_numbers = #tpu.dot_dimension_numbers<[1], [0], [0], [1], [0, 0, 1, 1], [], []>} : vector<16x24xf32>, vector<24x128xf32>, vector<16x128xf32> -> vector<16x128xf32>
    %c0_6 = arith.constant 0 : index
    %c0_7 = arith.constant 0 : index
    %5 = vector.load %arg2[%c0_6, %c0_7] : memref<16x1xf32, #tpu.memory_space<vmem>>, vector<16x1xf32>
    %c0_8 = arith.constant 0 : index
    %c0_9 = arith.constant 0 : index
    %6 = vector.load %arg4[%c0_8, %c0_9] : memref<1x128xf32, #tpu.memory_space<vmem>>, vector<1x128xf32>
    %7 = vector.broadcast %5 : vector<16x1xf32> to vector<16x128xf32>
    %8 = vector.broadcast %6 : vector<1x128xf32> to vector<16x128xf32>
    %9 = arith.mulf %7, %8 : vector<16x128xf32>
    %10 = arith.addf %4, %9 : vector<16x128xf32>
    %cst_10 = arith.constant 0.000000e+00 : f32
    %11 = vector.broadcast %cst_10 : f32 to vector<16x128xf32>
    %12 = arith.maximumf %10, %11 : vector<16x128xf32>
    %c0_11 = arith.constant 0 : index
    %c0_12 = arith.constant 0 : index
    %13 = vector.load %arg5[%c0_11, %c0_12] : memref<128x24xf32, #tpu.memory_space<vmem>>, vector<128x24xf32>
    %cst_13 = arith.constant dense<0.000000e+00> : vector<16x24xf32>
    %14 = tpu.matmul %12, %13, %cst_13 {dimension_numbers = #tpu.dot_dimension_numbers<[1], [0], [0], [1], [0, 0, 1, 1], [], []>} : vector<16x128xf32>, vector<128x24xf32>, vector<16x24xf32> -> vector<16x24xf32>
    %c0_14 = arith.constant 0 : index
    %c0_15 = arith.constant 0 : index
    %15 = vector.load %arg6[%c0_14, %c0_15] : memref<1x24xf32, #tpu.memory_space<vmem>>, vector<1x24xf32>
    %16 = vector.broadcast %15 : vector<1x24xf32> to vector<16x24xf32>
    %17 = arith.addf %14, %16 : vector<16x24xf32>
    %cst_16 = arith.constant dense<0.000000e+00> : vector<16x24xf32>
    %18 = tpu.matmul %1, %17, %cst_16 {dimension_numbers = #tpu.dot_dimension_numbers<[1], [0], [0], [1], [0, 0, 1, 1], [], []>} : vector<16x16xf32>, vector<16x24xf32>, vector<16x24xf32> -> vector<16x24xf32>
    %cst_17 = arith.constant 0.000000e+00 : f32
    %19 = vector.broadcast %cst_17 : f32 to vector<16x24xf32>
    %20 = arith.maximumf %18, %19 : vector<16x24xf32>
    %c0_18 = arith.constant 0 : index
    %c0_19 = arith.constant 0 : index
    %21 = vector.load %arg7[%c0_18, %c0_19] : memref<16x24xf32, #tpu.memory_space<vmem>>, vector<16x24xf32>
    tpu.vector_store %arg7[%c0_18, %c0_19], %20 {strides = array<i32>} : memref<16x24xf32, #tpu.memory_space<vmem>>, vector<16x24xf32>,
    return
  }
}

</mosaic_0001>

<bundles_post_ra>
// kernel: gcn_test_forward.1
= control target key start
LH: loop header
LB: loop body
LE: loop exit
PB: predicated region body
PF: predicated region fallthrough
CT: control target
= control target key end

     0   :  { %vm30_vm0 = vcmask 130048   ;;  %v500_v7 = vmov 0   ;;  %vm136_vm1 = vcmask 195584   ;;  %s644_s0 = inlined_call_operand.vmem [shape: f32[16,24], index: 0, kind: input, shape index: {}]   ;;  %s645_s1 = inlined_call_operand.vmem [shape: f32[16,16], index: 1, kind: input, shape index: {}]   ;;  %s646_s3 = inlined_call_operand.vmem [shape: f32[24,128], index: 3, kind: input, shape index: {}]   ;;  %s647_s2 = inlined_call_operand.vmem [shape: f32[16,1], index: 2, kind: input, shape index: {}]   ;;  %s648_s5 = inlined_call_operand.vmem [shape: f32[128,24], index: 5, kind: input, shape index: {}]   ;;  %s649_s4 = inlined_call_operand.vmem [shape: f32[1,128], index: 4, kind: input, shape index: {}]   ;;  %s650_s6 = inlined_call_operand.vmem [shape: f32[1,24], index: 6, kind: input, shape index: {}]   ;;  %s651_s7 = inlined_call_operand.vmem [shape: f32[16,24], index: 7, kind: output, shape index: {}]  }
   0x1   :  { %v27_v0 = vld [vmem:[%s644_s0 + $0x8] sm:$0xff]  ;;  %v26_v1 = vld [vmem:[%s644_s0] sm:$0xff]  ;;  %v114_v4 = vld [vmem:[%s646_s3 + $0x10] sm:$0xff]  ;;  %499 = vset.pattern.permute.xlu0 %v500_v7 }
   0x2   :  { %v550_v2 = vld [vmem:[%s645_s1] sm:$0xff]  ;;  %440 = vmatprep.subr.mxu1 %v27_v0  ;;  %v557_v3 = vld [vmem:[%s645_s1 + $0x8] sm:$0xff]  ;;  %v235_v9 = vld [vmem:[%s648_s5 + $0x78] sm:$0xff] }
   0x3   :  { %444 = vmatprep.mubr.msk.f32.mxu1 %vm30_vm0, %v550_v2  ;;  %441 = vmatpush3.msra.mxu1 %v27_v0  ;;  %v113_v5 = vld [vmem:[%s646_s3 + $0x8] sm:$0xff]  ;;  %v112_v6 = vld [vmem:[%s646_s3] sm:$0xff]  ;;  %v234_v10 = vld [vmem:[%s648_s5 + $0x70] sm:$0xff] }
   0x4   :  { %442 = vmatprep.subr.mxu1 %v26_v1  ;;  %v115_v8 = vld [vmem:[%s647_s2] sm:$0xff]  ;;  %456 = vmatprep.subr.mxu0 %v235_v9  ;;  %v116_v11 = vld [vmem:[%s647_s2 + $0x8] sm:$0xff]  ;;  %v231_v14 = vld [vmem:[%s648_s5 + $0x58] sm:$0xff] }
   0x5   :  { %443 = vmatpush3.msra.mxu1 %v26_v1  ;;  %120 = vperm.xlu0 %499, %v115_v8   ;;  %v233_v12 = vld [vmem:[%s648_s5 + $0x68] sm:$0xff]  ;;  %v232_v13 = vld [vmem:[%s648_s5 + $0x60] sm:$0xff]  ;;  %v230_v15 = vld [vmem:[%s648_s5 + $0x50] sm:$0xff] }
   0x6   :  { %445 = vmatmul.mubr.msk.f32.vlgmr.msra.gmra.mxu1 %vm30_vm0, %v557_v3  ;;  %447 = vmatprep.subr.mxu1 %v114_v4  ;;  %v229_v16 = vld [vmem:[%s648_s5 + $0x48] sm:$0xff]  ;;  %v228_v17 = vld [vmem:[%s648_s5 + $0x40] sm:$0xff]  ;;  %v227_v18 = vld [vmem:[%s648_s5 + $0x38] sm:$0xff] }
   0x7   :  { %448 = vmatpush3.msra.mxu1 %v114_v4  ;;  %457 = vmatpush3.msra.mxu0 %v235_v9  ;;  %v226_v19 = vld [vmem:[%s648_s5 + $0x30] sm:$0xff]  ;;  %v225_v20 = vld [vmem:[%s648_s5 + $0x28] sm:$0xff]  ;;  %v224_v21 = vld [vmem:[%s648_s5 + $0x20] sm:$0xff] }
   0x8   :  { %449 = vmatprep.subr.mxu1 %v113_v5  ;;  %458 = vmatprep.subr.mxu0 %v234_v10  ;;  %v223_v24 = vld [vmem:[%s648_s5 + $0x18] sm:$0xff]  ;;  %v222_v25 = vld [vmem:[%s648_s5 + $0x10] sm:$0xff]  ;;  %v221_v26 = vld [vmem:[%s648_s5 + $0x8] sm:$0xff] }
   0x9   :  { %450 = vmatpush3.msra.mxu1 %v113_v5  ;;  %459 = vmatpush3.msra.mxu0 %v234_v10  ;;  %v220_v27 = vld [vmem:[%s648_s5] sm:$0xff] }
   0xa   :  { %451 = vmatprep.subr.mxu1 %v112_v6  ;;  %125 = vperm.xlu0 %499, %v116_v11   ;;  %v403_v29 = vld [vmem:[%s649_s4] ss:$0 sm:$0xff] }
   0xb   :  { %452 = vmatpush3.msra.mxu1 %v112_v6  ;;  %460 = vmatprep.subr.mxu0 %v233_v12  ;;  %v406_v39 = vld [vmem:[%s650_s6] ss:$0 sm:$0xff] }
   0xc   :  { %461 = vmatpush3.msra.mxu0 %v233_v12 }
   0xd   :  { %462 = vmatprep.subr.mxu0 %v232_v13 }
   0xe   :  { %463 = vmatpush3.msra.mxu0 %v232_v13 }
   0xf   :  { %464 = vmatprep.subr.mxu0 %v231_v14 }
  0x10   :  { %465 = vmatpush3.msra.mxu0 %v231_v14 }
  0x11   :  { %466 = vmatprep.subr.mxu0 %v230_v15 }
  0x12   :  { %467 = vmatpush3.msra.mxu0 %v230_v15 }
  0x13   :  { %468 = vmatprep.subr.mxu0 %v229_v16 }
  0x14   :  { %469 = vmatpush3.msra.mxu0 %v229_v16 }
  0x15   :  { %470 = vmatprep.subr.mxu0 %v228_v17 }
  0x16   :  { %471 = vmatpush3.msra.mxu0 %v228_v17 }
  0x17   :  { %472 = vmatprep.subr.mxu0 %v227_v18 }
  0x18   :  { %473 = vmatpush3.msra.mxu0 %v227_v18 }
  0x19   :  { %474 = vmatprep.subr.mxu0 %v226_v19 }
  0x1a   :  { %475 = vmatpush3.msra.mxu0 %v226_v19 }
  0x1b   :  { %476 = vmatprep.subr.mxu0 %v225_v20 }
  0x1c   :  { %477 = vmatpush3.msra.mxu0 %v225_v20 }
  0x1d   :  { %478 = vmatprep.subr.mxu0 %v224_v21 }
  0x1e   :  { %479 = vmatpush3.msra.mxu0 %v224_v21 }
  0x1f   :  { %480 = vmatprep.subr.mxu0 %v223_v24 }
  0x20   :  { %481 = vmatpush3.msra.mxu0 %v223_v24 }
  0x21   :  { %482 = vmatprep.subr.mxu0 %v222_v25 }
  0x22   :  { %483 = vmatpush3.msra.mxu0 %v222_v25 }
  0x23   :  { %484 = vmatprep.subr.mxu0 %v221_v26 }
  0x24   :  { %485 = vmatpush3.msra.mxu0 %v221_v26 }
  0x25   :  { %486 = vmatprep.subr.mxu0 %v220_v27 }
  0x26   :  { %487 = vmatpush3.msra.mxu0 %v220_v27 }
  0x80   :  { %v121_v28 = vpop.permute.xlu0 %120 }
  0x81   :  { %v134_v33 = vmul.f32 %v403_v29, %v121_v28 }
  0x85   :  { %v126_v30 = vpop.permute.xlu0 %125 }
  0x86   :  { %v135_v31 = vmul.f32 %v403_v29, %v126_v30 }
  0xc6   :  { %v446_v22 = vpop.f32.mrf.mxu1 }
  0xc8   :  { %v103_v23 = vpop.f32.mrf.mxu1 }
  0xc9   :  { %453 = vmatprep.mubr.msk.f32.mxu1 %vm136_vm1, %v103_v23 }
  0xca   :  { %454 = vmatmul.mubr.msk.f32.vlgmr.msra.gmra.mxu1 %vm136_vm1, %v446_v22 }
  0xcb   :  { %495 = vmatprep.mubr.msk.f32.mxu1 %vm30_vm0, %v550_v2 }
 0x18a   :  { %v455_v32 = vpop.f32.mrf.mxu1 }
 0x18b   :  { %v215_v34 = vadd.f32 %v455_v32, %v135_v31 }
 0x18c   :  { %v209_v35 = vpop.f32.mrf.mxu1 }
 0x18d   :  { %v210_v36 = vadd.f32 %v209_v35, %v134_v33  ;;  %v219_v38 = vmax.f32 %v215_v34, 0.0 }
 0x18f   :  { %v218_v37 = vmax.f32 %v210_v36, 0.0 }
 0x191   :  { %488 = vmatprep.mubr.f32.mxu0 %v218_v37 }
 0x192   :  { %489 = vmatmul.mubr.f32.vlgmr.msra.gmra.mxu0 %v219_v38 }
 0x252   :  { %v490_v40 = vpop.f32.mrf.mxu0 }
 0x253   :  { %v315_v41 = vadd.f32 %v490_v40, %v406_v39 }
 0x254   :  { %v309_v42 = vpop.f32.mrf.mxu0 }
 0x255   :  { %v310_v43 = vadd.f32 %v406_v39, %v309_v42  ;;  %491 = vmatprep.subr.mxu1 %v315_v41 }
 0x256   :  { %492 = vmatpush3.msra.mxu1 %v315_v41 }
 0x257   :  { %493 = vmatprep.subr.mxu1 %v310_v43 }
 0x258   :  { %494 = vmatpush3.msra.mxu1 %v310_v43 }
 0x259   :  { %496 = vmatmul.mubr.msk.f32.vlgmr.msra.gmra.mxu1 %vm30_vm0, %v557_v3 }
 0x319   :  { %v497_v44 = vpop.f32.mrf.mxu1 }
 0x31a   :  { %v394_v45 = vmax.f32 %v497_v44, 0.0 }
 0x31b   :  { %v384_v46 = vpop.f32.mrf.mxu1 }
 0x31c   :  { %396 = vst.msk [vmem:[%s651_s7 + $0x8] sm:$0xff] %vm136_vm1, %v394_v45  ;;  %v393_v47 = vmax.f32 %v384_v46, 0.0 }
 0x31e   :  { %395 = vst.msk [vmem:[%s651_s7] sm:$0xff] %vm136_vm1, %v393_v47 }

</bundles_post_ra>
